<compile_context>
chip_gen: v7x
topology: tpu7x:2x2x1
jax: 0.10.0
libtpu: 0.0.40
codegen_flags: <defaults>
</compile_context>

<pallas_src>
import jax
import jax.numpy as jnp
from jax import lax
from jax.experimental import pallas as pl
from jax.experimental.pallas import tpu as pltpu

# ----------------------------- problem sizes -----------------------------
B = 2          # batch
T = 8          # target length
S = 8          # source length
E = 32         # emb_dim
H = 32         # hid_dim
K = 3          # kernel_size
L = 2          # n_layers
N = B * T      # stacked target rows
BS = B * S     # stacked source rows
SCALE = 0.7071067811865476  # sqrt(0.5)
OUT_W = 128    # lane-dense output width

# ---------------- slab A (lane width = E = 32): row offsets, 8-aligned ----------------
A_EMB   = 0      # (N+1, E): trg rows + pad_vector row
A_POS   = 24     # (N+1, E): tiled positional rows + zero row
A_ENCV  = 48     # (BS, E): encoder_conved stacked
A_ENCE  = 64     # (BS, E): encoder_embed stacked
A_SRC   = 80     # (BS, E): src stacked
A_MASK  = 96     # (N, BS): additive block-diag softmax mask (0 in-batch / -1e30 off-batch)
A_WE2H  = 112    # (E, H)
A_WAH2E = 144    # (H, E)
A_WAE2H = 176    # (E, H)
A_WFC   = 208    # (H, E)
A_ROWS  = 240

# ---------------- slab W (lane width = 2H = 64): row offsets ----------------
W_CONV = 0            # (L*K*H, 2H): rows (l*K + j)*H : +H  == conv_w[l, j]  (H, 2H)
W_BIAS = L * K * H    # 6 rows: b_e2h, b_ah2e, b_ae2h, b_fc (lanes 0:32), conv_b[0], conv_b[1]
W_ROWS = W_BIAS + 4 + L


def decoder_kernel(a_ref, w_ref, out_ref):
    """Single grid-less invocation; both batch elements stacked along sublanes."""
    scale = jnp.float32(SCALE)

    # ---- loop-invariant loads (static, tile-aligned slices of the two packed slabs) ----
    w_e2h  = a_ref[A_WE2H:  A_WE2H + E, :]           # (E, H)
    w_ah2e = a_ref[A_WAH2E: A_WAH2E + H, :]          # (H, E)
    w_ae2h = a_ref[A_WAE2H: A_WAE2H + E, :]          # (E, H)
    w_fc   = a_ref[A_WFC:   A_WFC + H, :]            # (H, E)

    b_e2h  = w_ref[W_BIAS + 0: W_BIAS + 1, :H]       # (1, H)
    b_ah2e = w_ref[W_BIAS + 1: W_BIAS + 2, :E]       # (1, E)
    b_ae2h = w_ref[W_BIAS + 2: W_BIAS + 3, :H]       # (1, H)
    b_fc   = w_ref[W_BIAS + 3: W_BIAS + 4, :E]       # (1, E)

    enc_conved = a_ref[A_ENCV: A_ENCV + BS, :]       # (BS, E)
    enc_embed  = a_ref[A_ENCE: A_ENCE + BS, :]       # (BS, E)
    src_s      = a_ref[A_SRC:  A_SRC + BS, :]        # (BS, E)
    blk_bias   = a_ref[A_MASK: A_MASK + N, :BS]      # (N, BS) additive softmax mask

    # ---- embedding + fused emb2hid (pad vector rides along as row N) ----
    x = a_ref[A_EMB: A_EMB + N + 1, :] + a_ref[A_POS: A_POS + N + 1, :]     # (N+1, E)
    h = jnp.tanh(jnp.dot(x, w_e2h, preferred_element_type=jnp.float32) + b_e2h)
    conv_in = h[:N, :]                                                      # (N, H)
    pad_b = jnp.broadcast_to(h[N:N + 1, :], (N, H))                         # hoisted once

    # per-batch local time index masks for the causal left pad (hoisted out of the layer loop)
    local_t = lax.broadcasted_iota(jnp.int32, (B, T, H), 1).reshape(N, H)
    pad_masks = {s: local_t < s for s in range(1, K)}

    attention = None
    for l in range(L):
        # ---- causal conv as per-tap matmul accumulation (no im2col lane concat):
        # tap j = conv_in shifted down by s = K-1-j rows (static sublane rotate, XLU);
        # rows with local_t < s take the projected pad vector (exactly the rows where
        # the rotate wrapped across the batch boundary, so the wrap is harmless).
        wbase = W_CONV + l * K * H
        acc = w_ref[W_BIAS + 4 + l: W_BIAS + 5 + l, :]          # (1, 2H) conv bias, broadcasts
        for j in range(K):
            s = K - 1 - j
            if s == 0:
                tap = conv_in
            else:
                tap = jnp.where(pad_masks[s], pad_b,
                                pltpu.roll(conv_in, shift=s, axis=0))
            w_tap = w_ref[wbase + j * H: wbase + (j + 1) * H, :]            # (H, 2H)
            acc = acc + jnp.dot(tap, w_tap, preferred_element_type=jnp.float32)
        conved = acc[:, :H] * jax.nn.sigmoid(acc[:, H:])                    # GLU, (N, H)

        # ---- attention on the stacked (N, BS) view: plain 2-D matmuls + block-diag mask ----
        ce = jnp.tanh(jnp.dot(conved, w_ah2e, preferred_element_type=jnp.float32) + b_ah2e)
        energy = lax.dot_general(ce, enc_conved, (((1,), (1,)), ((), ())),
                                 preferred_element_type=jnp.float32)        # (N, BS)
        energy = energy + blk_bias                  # mask cross-batch BEFORE max-subtract
        energy = energy - jnp.max(energy, axis=-1, keepdims=True)
        ez = jnp.exp(energy)                        # off-batch entries underflow to exactly 0
        denom = jnp.sum(ez, axis=-1, keepdims=True)
        inv = pl.reciprocal(denom, approx=True)     # EUP vrcp (~2^-12 rel err)
        inv = inv * (2.0 - denom * inv)             # one Newton step -> ~2^-24 rel err
        attention = ez * inv                        # (N, BS), block-diagonal

        attended = jnp.dot(attention, enc_embed, preferred_element_type=jnp.float32)   # (N, E)
        attended = jnp.tanh(jnp.dot(attended, w_ae2h, preferred_element_type=jnp.float32)
                            + b_ae2h)                                       # (N, H)

        conved = (conved + attended) * scale        # attended_combined
        conved = (conved + conv_in) * scale         # residual
        conv_in = conved

    # ---- output = (fc_out(conved) + attention @ src) * scale, written lane-dense ----
    attended_src = jnp.dot(attention, src_s, preferred_element_type=jnp.float32)        # (N, E)
    out = (jnp.dot(conv_in, w_fc, preferred_element_type=jnp.float32)
           + b_fc + attended_src) * scale                                   # (N, E)

    out_ref[:, :E] = out
    out_ref[:, E:E + BS] = attention
    out_ref[:, E + BS:] = jnp.zeros((N, OUT_W - E - BS), jnp.float32)


def _pack_inputs(trg, src, encoder_conved, encoder_embed, params):
    """Wrapper-side packing (free XLA layout plumbing) into two dense slabs."""
    a32 = jnp.zeros((A_ROWS, E), jnp.float32)
    a32 = a32.at[A_EMB:A_EMB + N].set(trg.reshape(N, E))
    a32 = a32.at[A_EMB + N].set(params["pad_vec"][0])
    a32 = a32.at[A_POS:A_POS + N].set(jnp.tile(params["pos_emb"][:T], (B, 1)))
    a32 = a32.at[A_ENCV:A_ENCV + BS].set(encoder_conved.reshape(BS, E))
    a32 = a32.at[A_ENCE:A_ENCE + BS].set(encoder_embed.reshape(BS, E))
    a32 = a32.at[A_SRC:A_SRC + BS].set(src.reshape(BS, E))
    row_b = jnp.arange(N) // T
    col_b = jnp.arange(BS) // S
    blk_bias = jnp.where(row_b[:, None] == col_b[None, :], 0.0, -1e30).astype(jnp.float32)
    a32 = a32.at[A_MASK:A_MASK + N, :BS].set(blk_bias)
    a32 = a32.at[A_WE2H:A_WE2H + E].set(params["w_e2h"])
    a32 = a32.at[A_WAH2E:A_WAH2E + H].set(params["w_ah2e"])
    a32 = a32.at[A_WAE2H:A_WAE2H + E].set(params["w_ae2h"])
    a32 = a32.at[A_WFC:A_WFC + H].set(params["w_fc"])

    w64 = jnp.zeros((W_ROWS, 2 * H), jnp.float32)
    w64 = w64.at[W_CONV:W_CONV + L * K * H].set(params["conv_w"].reshape(L * K * H, 2 * H))
    w64 = w64.at[W_BIAS + 0, :H].set(params["b_e2h"][0])
    w64 = w64.at[W_BIAS + 1, :E].set(params["b_ah2e"][0])
    w64 = w64.at[W_BIAS + 2, :H].set(params["b_ae2h"][0])
    w64 = w64.at[W_BIAS + 3, :E].set(params["b_fc"][0])
    w64 = w64.at[W_BIAS + 4:W_BIAS + 4 + L].set(params["conv_b"][:, 0, :])
    return a32, w64


def _decoder_forward(trg, src, encoder_conved, encoder_embed, params):
    a32, w64 = _pack_inputs(trg, src, encoder_conved, encoder_embed, params)

    vmem = pl.BlockSpec(memory_space=pltpu.MemorySpace.VMEM)
    cost = pl.CostEstimate(
        flops=700_000,
        transcendentals=4_500,
        bytes_accessed=4 * (A_ROWS * E + W_ROWS * 2 * H + N * OUT_W),
    )
    slab = pl.pallas_call(
        decoder_kernel,
        out_shape=jax.ShapeDtypeStruct((N, OUT_W), jnp.float32),
        in_specs=[vmem, vmem],
        out_specs=vmem,
        cost_estimate=cost,
    )(a32, w64)

    out = slab[:, :E].reshape(B, T, E)
    attn = jnp.stack(
        [slab[b * T:(b + 1) * T, E + b * S: E + (b + 1) * S] for b in range(B)], axis=0)
    return out, attn


decoder_forward = jax.jit(_decoder_forward)


def decoder_reference(trg, src, encoder_conved, encoder_embed, params):
    """Pure-JAX reference mirroring the PyTorch forward (eval mode, sample=False)."""
    scale = SCALE
    embedded = trg + params["pos_emb"][:T][None]                              # (B, T, E)
    conv_input = jnp.tanh(embedded @ params["w_e2h"] + params["b_e2h"])       # (B, T, H)
    pad_proj = jnp.tanh(params["pad_vec"] @ params["w_e2h"] + params["b_e2h"])  # (1, H)
    attention = None
    for l in range(L):
        x_pad = jnp.concatenate(
            [jnp.broadcast_to(pad_proj[None], (B, K - 1, H)), conv_input], axis=1)
        acc = jnp.broadcast_to(params["conv_b"][l], (B, T, 2 * H))
        for j in range(K):
            acc = acc + x_pad[:, j:j + T, :] @ params["conv_w"][l, j]
        conved = acc[..., :H] * jax.nn.sigmoid(acc[..., H:])
        conved_emb = jnp.tanh(conved @ params["w_ah2e"] + params["b_ah2e"])
        energy = jnp.einsum("bte,bse->bts", conved_emb, encoder_conved)
        attention = jax.nn.softmax(energy, axis=-1)
        attended = jnp.einsum("bts,bse->bte", attention, encoder_embed)
        attended = jnp.tanh(attended @ params["w_ae2h"] + params["b_ae2h"])
        conved = (conved + attended) * scale
        conved = (conved + conv_input) * scale
        conv_input = conved
    attended_src = jnp.einsum("bts,bse->bte", attention, src)
    out = (conv_input @ params["w_fc"] + params["b_fc"] + attended_src) * scale
    return out, attention


def make_params(key):
    ks = jax.random.split(key, 12)
    f = lambda k, shp, s=0.1: (s * jax.random.normal(k, shp)).astype(jnp.float32)
    return {
        "pos_emb": f(ks[0], (150, E)),            # nn.Embedding(max_length, emb_dim)
        "pad_vec": f(ks[1], (1, E)),              # pad_vector (flattened from (1,1,E))
        "w_e2h":  f(ks[2], (E, H)), "b_e2h":  f(ks[3], (1, H)),
        "w_ah2e": f(ks[4], (H, E)), "b_ah2e": f(ks[5], (1, E)),
        "w_ae2h": f(ks[6], (E, H)), "b_ae2h": f(ks[7], (1, H)),
        "w_fc":   f(ks[8], (H, E)), "b_fc":   f(ks[9], (1, E)),
        # Conv1d weight per tap j == torch weight[:, :, j].T  (tap 0 -> oldest timestep)
        "conv_w": f(ks[10], (L, K, H, 2 * H)),
        "conv_b": f(ks[11], (L, 1, 2 * H)),
    }
    # TODO(synk): sample=True branch (torch.distributions Categorical sampling + gather)
    # and the optional external attention mask are not implemented.


if __name__ == "__main__":
    key = jax.random.PRNGKey(0)
    kp, k1, k2, k3, k4 = jax.random.split(key, 5)
    params = make_params(kp)

    trg = jax.random.normal(k1, (B, T, E), dtype=jnp.float32)
    src = jax.random.normal(k2, (B, S, E), dtype=jnp.float32)
    encoder_conved = jax.random.normal(k3, (B, S, E), dtype=jnp.float32)
    encoder_embed = jax.random.normal(k4, (B, S, E), dtype=jnp.float32)

    out, attn = decoder_forward(trg, src, encoder_conved, encoder_embed, params)
    out, attn = jax.block_until_ready(out), jax.block_until_ready(attn)

    ref_out, ref_attn = decoder_reference(trg, src, encoder_conved, encoder_embed, params)
    assert jnp.allclose(out, ref_out, atol=1e-4, rtol=1e-4), "output mismatch"
    assert jnp.allclose(attn, ref_attn, atol=1e-5, rtol=1e-4), "attention mismatch"

    print("KERNEL_OK")
</pallas_src>

<mosaic_0001>
module attributes {stable_mosaic.version = 11 : i64} {
  func.func @decoder_kernel(%arg0: memref<240x32xf32, #tpu.memory_space<vmem>>, %arg1: memref<198x64xf32, #tpu.memory_space<vmem>>, %arg2: memref<16x128xf32, #tpu.memory_space<vmem>>) attributes {dimension_semantics = [], scalar_prefetch = 0 : i64, scratch_operands = 0 : i64, tpu.core_type = #tpu.core_type<tc>} {
    %c112 = arith.constant 112 : index
    %c0 = arith.constant 0 : index
    %0 = vector.load %arg0[%c112, %c0] : memref<240x32xf32, #tpu.memory_space<vmem>>, vector<32x32xf32>
    %c144 = arith.constant 144 : index
    %c0_0 = arith.constant 0 : index
    %1 = vector.load %arg0[%c144, %c0_0] : memref<240x32xf32, #tpu.memory_space<vmem>>, vector<32x32xf32>
    %c176 = arith.constant 176 : index
    %c0_1 = arith.constant 0 : index
    %2 = vector.load %arg0[%c176, %c0_1] : memref<240x32xf32, #tpu.memory_space<vmem>>, vector<32x32xf32>
    %c208 = arith.constant 208 : index
    %c0_2 = arith.constant 0 : index
    %3 = vector.load %arg0[%c208, %c0_2] : memref<240x32xf32, #tpu.memory_space<vmem>>, vector<32x32xf32>
    %c192 = arith.constant 192 : index
    %c0_3 = arith.constant 0 : index
    %4 = vector.load %arg1[%c192, %c0_3] : memref<198x64xf32, #tpu.memory_space<vmem>>, vector<1x32xf32>
    %c193 = arith.constant 193 : index
    %c0_4 = arith.constant 0 : index
    %5 = vector.load %arg1[%c193, %c0_4] : memref<198x64xf32, #tpu.memory_space<vmem>>, vector<1x32xf32>
    %c194 = arith.constant 194 : index
    %c0_5 = arith.constant 0 : index
    %6 = vector.load %arg1[%c194, %c0_5] : memref<198x64xf32, #tpu.memory_space<vmem>>, vector<1x32xf32>
    %c195 = arith.constant 195 : index
    %c0_6 = arith.constant 0 : index
    %7 = vector.load %arg1[%c195, %c0_6] : memref<198x64xf32, #tpu.memory_space<vmem>>, vector<1x32xf32>
    %c48 = arith.constant 48 : index
    %c0_7 = arith.constant 0 : index
    %8 = vector.load %arg0[%c48, %c0_7] : memref<240x32xf32, #tpu.memory_space<vmem>>, vector<16x32xf32>
    %c64 = arith.constant 64 : index
    %c0_8 = arith.constant 0 : index
    %9 = vector.load %arg0[%c64, %c0_8] : memref<240x32xf32, #tpu.memory_space<vmem>>, vector<16x32xf32>
    %c80 = arith.constant 80 : index
    %c0_9 = arith.constant 0 : index
    %10 = vector.load %arg0[%c80, %c0_9] : memref<240x32xf32, #tpu.memory_space<vmem>>, vector<16x32xf32>
    %c96 = arith.constant 96 : index
    %c0_10 = arith.constant 0 : index
    %11 = vector.load %arg0[%c96, %c0_10] : memref<240x32xf32, #tpu.memory_space<vmem>>, vector<16x16xf32>
    %c0_11 = arith.constant 0 : index
    %c0_12 = arith.constant 0 : index
    %12 = vector.load %arg0[%c0_11, %c0_12] : memref<240x32xf32, #tpu.memory_space<vmem>>, vector<17x32xf32>
    %c24 = arith.constant 24 : index
    %c0_13 = arith.constant 0 : index
    %13 = vector.load %arg0[%c24, %c0_13] : memref<240x32xf32, #tpu.memory_space<vmem>>, vector<17x32xf32>
    %14 = arith.addf %12, %13 : vector<17x32xf32>
    %cst = arith.constant dense<0.000000e+00> : vector<17x32xf32>
    %15 = tpu.matmul %14, %0, %cst {dimension_numbers = #tpu.dot_dimension_numbers<[1], [0], [0], [1], [0, 0, 1, 1], [], []>} : vector<17x32xf32>, vector<32x32xf32>, vector<17x32xf32> -> vector<17x32xf32>
    %16 = vector.broadcast %4 : vector<1x32xf32> to vector<17x32xf32>
    %17 = arith.addf %15, %16 : vector<17x32xf32>
    %18 = math.tanh %17 : vector<17x32xf32>
    %19 = vector.extract_strided_slice %18 {offsets = [0, 0], sizes = [16, 32], strides = [1, 1]} : vector<17x32xf32> to vector<16x32xf32>
    %20 = vector.extract_strided_slice %18 {offsets = [16, 0], sizes = [1, 32], strides = [1, 1]} : vector<17x32xf32> to vector<1x32xf32>
    %21 = vector.shape_cast %20 : vector<1x32xf32> to vector<1x32xf32>
    %22 = vector.broadcast %21 : vector<1x32xf32> to vector<16x32xf32>
    %23 = tpu.iota {dimensions = array<i32: 1>} : vector<2x8x32xi32>
    %24 = vector.shape_cast %23 : vector<2x8x32xi32> to vector<16x32xi32>
    %c1_i32 = arith.constant 1 : i32
    %25 = vector.broadcast %c1_i32 : i32 to vector<16x32xi32>
    %26 = arith.cmpi slt, %24, %25 : vector<16x32xi32>
    %c2_i32 = arith.constant 2 : i32
    %27 = vector.broadcast %c2_i32 : i32 to vector<16x32xi32>
    %28 = arith.cmpi slt, %24, %27 : vector<16x32xi32>
    %c196 = arith.constant 196 : index
    %c0_14 = arith.constant 0 : index
    %29 = vector.load %arg1[%c196, %c0_14] : memref<198x64xf32, #tpu.memory_space<vmem>>, vector<1x64xf32>
    %c2_i32_15 = arith.constant 2 : i32
    %30 = tpu.dynamic_rotate %19 by %c2_i32_15 dim 0 : vector<16x32xf32>, i32 -> vector<16x32xf32>
    %31 = arith.select %28, %22, %30 : vector<16x32xi1>, vector<16x32xf32>
    %c0_16 = arith.constant 0 : index
    %c0_17 = arith.constant 0 : index
    %32 = vector.load %arg1[%c0_16, %c0_17] : memref<198x64xf32, #tpu.memory_space<vmem>>, vector<32x64xf32>
    %cst_18 = arith.constant dense<0.000000e+00> : vector<16x64xf32>
    %33 = tpu.matmul %31, %32, %cst_18 {dimension_numbers = #tpu.dot_dimension_numbers<[1], [0], [0], [1], [0, 0, 1, 1], [], []>} : vector<16x32xf32>, vector<32x64xf32>, vector<16x64xf32> -> vector<16x64xf32>
    %34 = vector.broadcast %29 : vector<1x64xf32> to vector<16x64xf32>
    %35 = arith.addf %34, %33 : vector<16x64xf32>
    %c1_i32_19 = arith.constant 1 : i32
    %36 = tpu.dynamic_rotate %19 by %c1_i32_19 dim 0 : vector<16x32xf32>, i32 -> vector<16x32xf32>
    %37 = arith.select %26, %22, %36 : vector<16x32xi1>, vector<16x32xf32>
    %c32 = arith.constant 32 : index
    %c0_20 = arith.constant 0 : index
    %38 = vector.load %arg1[%c32, %c0_20] : memref<198x64xf32, #tpu.memory_space<vmem>>, vector<32x64xf32>
    %cst_21 = arith.constant dense<0.000000e+00> : vector<16x64xf32>
    %39 = tpu.matmul %37, %38, %cst_21 {dimension_numbers = #tpu.dot_dimension_numbers<[1], [0], [0], [1], [0, 0, 1, 1], [], []>} : vector<16x32xf32>, vector<32x64xf32>, vector<16x64xf32> -> vector<16x64xf32>
    %40 = arith.addf %35, %39 : vector<16x64xf32>
    %c64_22 = arith.constant 64 : index
    %c0_23 = arith.constant 0 : index
    %41 = vector.load %arg1[%c64_22, %c0_23] : memref<198x64xf32, #tpu.memory_space<vmem>>, vector<32x64xf32>
    %cst_24 = arith.constant dense<0.000000e+00> : vector<16x64xf32>
    %42 = tpu.matmul %19, %41, %cst_24 {dimension_numbers = #tpu.dot_dimension_numbers<[1], [0], [0], [1], [0, 0, 1, 1], [], []>} : vector<16x32xf32>, vector<32x64xf32>, vector<16x64xf32> -> vector<16x64xf32>
    %43 = arith.addf %40, %42 : vector<16x64xf32>
    %44 = vector.extract_strided_slice %43 {offsets = [0, 0], sizes = [16, 32], strides = [1, 1]} : vector<16x64xf32> to vector<16x32xf32>
    %45 = vector.extract_strided_slice %43 {offsets = [0, 32], sizes = [16, 32], strides = [1, 1]} : vector<16x64xf32> to vector<16x32xf32>
    %46 = arith.negf %45 : vector<16x32xf32>
    %47 = math.exp %46 : vector<16x32xf32>
    %cst_25 = arith.constant 1.000000e+00 : f32
    %48 = vector.broadcast %cst_25 : f32 to vector<16x32xf32>
    %49 = arith.addf %48, %47 : vector<16x32xf32>
    %50 = arith.divf %48, %49 : vector<16x32xf32>
    %51 = arith.mulf %44, %50 : vector<16x32xf32>
    %cst_26 = arith.constant dense<0.000000e+00> : vector<16x32xf32>
    %52 = tpu.matmul %51, %1, %cst_26 {dimension_numbers = #tpu.dot_dimension_numbers<[1], [0], [0], [1], [0, 0, 1, 1], [], []>} : vector<16x32xf32>, vector<32x32xf32>, vector<16x32xf32> -> vector<16x32xf32>
    %53 = vector.broadcast %5 : vector<1x32xf32> to vector<16x32xf32>
    %54 = arith.addf %52, %53 : vector<16x32xf32>
    %55 = math.tanh %54 : vector<16x32xf32>
    %cst_27 = arith.constant dense<0.000000e+00> : vector<16x16xf32>
    %56 = tpu.matmul %55, %8, %cst_27 {dimension_numbers = #tpu.dot_dimension_numbers<[1], [1], [0], [0], [0, 0, 1, 0], [], []>} : vector<16x32xf32>, vector<16x32xf32>, vector<16x16xf32> -> vector<16x16xf32>
    %57 = arith.addf %56, %11 : vector<16x16xf32>
    %cst_28 = arith.constant dense<0xFF800000> : vector<16xf32>
    %58 = vector.multi_reduction <maximumf>, %57, %cst_28 [1] : vector<16x16xf32> to vector<16xf32>
    %59 = vector.shape_cast %58 : vector<16xf32> to vector<16x1xf32>
    %60 = vector.broadcast %59 : vector<16x1xf32> to vector<16x16xf32>
    %61 = arith.subf %57, %60 : vector<16x16xf32>
    %62 = math.exp %61 : vector<16x16xf32>
    %cst_29 = arith.constant dense<0.000000e+00> : vector<16xf32>
    %63 = vector.multi_reduction <add>, %62, %cst_29 [1] : vector<16x16xf32> to vector<16xf32>
    %64 = vector.shape_cast %63 : vector<16xf32> to vector<16x1xf32>
    %65 = tpu.reciprocal %64 {approx = true} : vector<16x1xf32> -> vector<16x1xf32>
    %66 = arith.mulf %64, %65 : vector<16x1xf32>
    %cst_30 = arith.constant 2.000000e+00 : f32
    %67 = vector.broadcast %cst_30 : f32 to vector<16x1xf32>
    %68 = arith.subf %67, %66 : vector<16x1xf32>
    %69 = arith.mulf %65, %68 : vector<16x1xf32>
    %70 = vector.broadcast %69 : vector<16x1xf32> to vector<16x16xf32>
    %71 = arith.mulf %62, %70 : vector<16x16xf32>
    %cst_31 = arith.constant dense<0.000000e+00> : vector<16x32xf32>
    %72 = tpu.matmul %71, %9, %cst_31 {dimension_numbers = #tpu.dot_dimension_numbers<[1], [0], [0], [1], [0, 0, 1, 1], [], []>} : vector<16x16xf32>, vector<16x32xf32>, vector<16x32xf32> -> vector<16x32xf32>
    %cst_32 = arith.constant dense<0.000000e+00> : vector<16x32xf32>
    %73 = tpu.matmul %72, %2, %cst_32 {dimension_numbers = #tpu.dot_dimension_numbers<[1], [0], [0], [1], [0, 0, 1, 1], [], []>} : vector<16x32xf32>, vector<32x32xf32>, vector<16x32xf32> -> vector<16x32xf32>
    %74 = vector.broadcast %6 : vector<1x32xf32> to vector<16x32xf32>
    %75 = arith.addf %73, %74 : vector<16x32xf32>
    %76 = math.tanh %75 : vector<16x32xf32>
    %77 = arith.addf %51, %76 : vector<16x32xf32>
    %cst_33 = arith.constant 0.707106769 : f32
    %78 = vector.broadcast %cst_33 : f32 to vector<16x32xf32>
    %79 = arith.mulf %77, %78 : vector<16x32xf32>
    %80 = arith.addf %79, %19 : vector<16x32xf32>
    %cst_34 = arith.constant 0.707106769 : f32
    %81 = vector.broadcast %cst_34 : f32 to vector<16x32xf32>
    %82 = arith.mulf %80, %81 : vector<16x32xf32>
    %c197 = arith.constant 197 : index
    %c0_35 = arith.constant 0 : index
    %83 = vector.load %arg1[%c197, %c0_35] : memref<198x64xf32, #tpu.memory_space<vmem>>, vector<1x64xf32>
    %c2_i32_36 = arith.constant 2 : i32
    %84 = tpu.dynamic_rotate %82 by %c2_i32_36 dim 0 : vector<16x32xf32>, i32 -> vector<16x32xf32>
    %85 = arith.select %28, %22, %84 : vector<16x32xi1>, vector<16x32xf32>
    %c96_37 = arith.constant 96 : index
    %c0_38 = arith.constant 0 : index
    %86 = vector.load %arg1[%c96_37, %c0_38] : memref<198x64xf32, #tpu.memory_space<vmem>>, vector<32x64xf32>
    %cst_39 = arith.constant dense<0.000000e+00> : vector<16x64xf32>
    %87 = tpu.matmul %85, %86, %cst_39 {dimension_numbers = #tpu.dot_dimension_numbers<[1], [0], [0], [1], [0, 0, 1, 1], [], []>} : vector<16x32xf32>, vector<32x64xf32>, vector<16x64xf32> -> vector<16x64xf32>
    %88 = vector.broadcast %83 : vector<1x64xf32> to vector<16x64xf32>
    %89 = arith.addf %88, %87 : vector<16x64xf32>
    %c1_i32_40 = arith.constant 1 : i32
    %90 = tpu.dynamic_rotate %82 by %c1_i32_40 dim 0 : vector<16x32xf32>, i32 -> vector<16x32xf32>
    %91 = arith.select %26, %22, %90 : vector<16x32xi1>, vector<16x32xf32>
    %c128 = arith.constant 128 : index
    %c0_41 = arith.constant 0 : index
    %92 = vector.load %arg1[%c128, %c0_41] : memref<198x64xf32, #tpu.memory_space<vmem>>, vector<32x64xf32>
    %cst_42 = arith.constant dense<0.000000e+00> : vector<16x64xf32>
    %93 = tpu.matmul %91, %92, %cst_42 {dimension_numbers = #tpu.dot_dimension_numbers<[1], [0], [0], [1], [0, 0, 1, 1], [], []>} : vector<16x32xf32>, vector<32x64xf32>, vector<16x64xf32> -> vector<16x64xf32>
    %94 = arith.addf %89, %93 : vector<16x64xf32>
    %c160 = arith.constant 160 : index
    %c0_43 = arith.constant 0 : index
    %95 = vector.load %arg1[%c160, %c0_43] : memref<198x64xf32, #tpu.memory_space<vmem>>, vector<32x64xf32>
    %cst_44 = arith.constant dense<0.000000e+00> : vector<16x64xf32>
    %96 = tpu.matmul %82, %95, %cst_44 {dimension_numbers = #tpu.dot_dimension_numbers<[1], [0], [0], [1], [0, 0, 1, 1], [], []>} : vector<16x32xf32>, vector<32x64xf32>, vector<16x64xf32> -> vector<16x64xf32>
    %97 = arith.addf %94, %96 : vector<16x64xf32>
    %98 = vector.extract_strided_slice %97 {offsets = [0, 0], sizes = [16, 32], strides = [1, 1]} : vector<16x64xf32> to vector<16x32xf32>
    %99 = vector.extract_strided_slice %97 {offsets = [0, 32], sizes = [16, 32], strides = [1, 1]} : vector<16x64xf32> to vector<16x32xf32>
    %100 = arith.negf %99 : vector<16x32xf32>
    %101 = math.exp %100 : vector<16x32xf32>
    %cst_45 = arith.constant 1.000000e+00 : f32
    %102 = vector.broadcast %cst_45 : f32 to vector<16x32xf32>
    %103 = arith.addf %102, %101 : vector<16x32xf32>
    %104 = arith.divf %102, %103 : vector<16x32xf32>
    %105 = arith.mulf %98, %104 : vector<16x32xf32>
    %cst_46 = arith.constant dense<0.000000e+00> : vector<16x32xf32>
    %106 = tpu.matmul %105, %1, %cst_46 {dimension_numbers = #tpu.dot_dimension_numbers<[1], [0], [0], [1], [0, 0, 1, 1], [], []>} : vector<16x32xf32>, vector<32x32xf32>, vector<16x32xf32> -> vector<16x32xf32>
    %107 = vector.broadcast %5 : vector<1x32xf32> to vector<16x32xf32>
    %108 = arith.addf %106, %107 : vector<16x32xf32>
    %109 = math.tanh %108 : vector<16x32xf32>
    %cst_47 = arith.constant dense<0.000000e+00> : vector<16x16xf32>
    %110 = tpu.matmul %109, %8, %cst_47 {dimension_numbers = #tpu.dot_dimension_numbers<[1], [1], [0], [0], [0, 0, 1, 0], [], []>} : vector<16x32xf32>, vector<16x32xf32>, vector<16x16xf32> -> vector<16x16xf32>
    %111 = arith.addf %110, %11 : vector<16x16xf32>
    %cst_48 = arith.constant dense<0xFF800000> : vector<16xf32>
    %112 = vector.multi_reduction <maximumf>, %111, %cst_48 [1] : vector<16x16xf32> to vector<16xf32>
    %113 = vector.shape_cast %112 : vector<16xf32> to vector<16x1xf32>
    %114 = vector.broadcast %113 : vector<16x1xf32> to vector<16x16xf32>
    %115 = arith.subf %111, %114 : vector<16x16xf32>
    %116 = math.exp %115 : vector<16x16xf32>
    %cst_49 = arith.constant dense<0.000000e+00> : vector<16xf32>
    %117 = vector.multi_reduction <add>, %116, %cst_49 [1] : vector<16x16xf32> to vector<16xf32>
    %118 = vector.shape_cast %117 : vector<16xf32> to vector<16x1xf32>
    %119 = tpu.reciprocal %118 {approx = true} : vector<16x1xf32> -> vector<16x1xf32>
    %120 = arith.mulf %118, %119 : vector<16x1xf32>
    %cst_50 = arith.constant 2.000000e+00 : f32
    %121 = vector.broadcast %cst_50 : f32 to vector<16x1xf32>
    %122 = arith.subf %121, %120 : vector<16x1xf32>
    %123 = arith.mulf %119, %122 : vector<16x1xf32>
    %124 = vector.broadcast %123 : vector<16x1xf32> to vector<16x16xf32>
    %125 = arith.mulf %116, %124 : vector<16x16xf32>
    %cst_51 = arith.constant dense<0.000000e+00> : vector<16x32xf32>
    %126 = tpu.matmul %125, %9, %cst_51 {dimension_numbers = #tpu.dot_dimension_numbers<[1], [0], [0], [1], [0, 0, 1, 1], [], []>} : vector<16x16xf32>, vector<16x32xf32>, vector<16x32xf32> -> vector<16x32xf32>
    %cst_52 = arith.constant dense<0.000000e+00> : vector<16x32xf32>
    %127 = tpu.matmul %126, %2, %cst_52 {dimension_numbers = #tpu.dot_dimension_numbers<[1], [0], [0], [1], [0, 0, 1, 1], [], []>} : vector<16x32xf32>, vector<32x32xf32>, vector<16x32xf32> -> vector<16x32xf32>
    %128 = vector.broadcast %6 : vector<1x32xf32> to vector<16x32xf32>
    %129 = arith.addf %127, %128 : vector<16x32xf32>
    %130 = math.tanh %129 : vector<16x32xf32>
    %131 = arith.addf %105, %130 : vector<16x32xf32>
    %cst_53 = arith.constant 0.707106769 : f32
    %132 = vector.broadcast %cst_53 : f32 to vector<16x32xf32>
    %133 = arith.mulf %131, %132 : vector<16x32xf32>
    %134 = arith.addf %133, %82 : vector<16x32xf32>
    %cst_54 = arith.constant 0.707106769 : f32
    %135 = vector.broadcast %cst_54 : f32 to vector<16x32xf32>
    %136 = arith.mulf %134, %135 : vector<16x32xf32>
    %cst_55 = arith.constant dense<0.000000e+00> : vector<16x32xf32>
    %137 = tpu.matmul %125, %10, %cst_55 {dimension_numbers = #tpu.dot_dimension_numbers<[1], [0], [0], [1], [0, 0, 1, 1], [], []>} : vector<16x16xf32>, vector<16x32xf32>, vector<16x32xf32> -> vector<16x32xf32>
    %cst_56 = arith.constant dense<0.000000e+00> : vector<16x32xf32>
    %138 = tpu.matmul %136, %3, %cst_56 {dimension_numbers = #tpu.dot_dimension_numbers<[1], [0], [0], [1], [0, 0, 1, 1], [], []>} : vector<16x32xf32>, vector<32x32xf32>, vector<16x32xf32> -> vector<16x32xf32>
    %139 = vector.broadcast %7 : vector<1x32xf32> to vector<16x32xf32>
    %140 = arith.addf %138, %139 : vector<16x32xf32>
    %141 = arith.addf %140, %137 : vector<16x32xf32>
    %cst_57 = arith.constant 0.707106769 : f32
    %142 = vector.broadcast %cst_57 : f32 to vector<16x32xf32>
    %143 = arith.mulf %141, %142 : vector<16x32xf32>
    %c0_58 = arith.constant 0 : index
    %c0_59 = arith.constant 0 : index
    %144 = vector.load %arg2[%c0_58, %c0_59] : memref<16x128xf32, #tpu.memory_space<vmem>>, vector<16x32xf32>
    tpu.vector_store %arg2[%c0_58, %c0_59], %143 {strides = array<i32>} : memref<16x128xf32, #tpu.memory_space<vmem>>, vector<16x32xf32>,
    %c0_60 = arith.constant 0 : index
    %c32_61 = arith.constant 32 : index
    %145 = vector.load %arg2[%c0_60, %c32_61] : memref<16x128xf32, #tpu.memory_space<vmem>>, vector<16x16xf32>
    tpu.vector_store %arg2[%c0_60, %c32_61], %125 {strides = array<i32>} : memref<16x128xf32, #tpu.memory_space<vmem>>, vector<16x16xf32>,
    %cst_62 = arith.constant 0.000000e+00 : f32
    %146 = vector.broadcast %cst_62 : f32 to vector<16x80xf32>
    %c0_63 = arith.constant 0 : index
    %c48_64 = arith.constant 48 : index
    %147 = vector.load %arg2[%c0_63, %c48_64] : memref<16x128xf32, #tpu.memory_space<vmem>>, vector<16x80xf32>
    tpu.vector_store %arg2[%c0_63, %c48_64], %146 {strides = array<i32>} : memref<16x128xf32, #tpu.memory_space<vmem>>, vector<16x80xf32>,
    return
  }
}

</mosaic_0001>

<bundles_post_ra>
// kernel: _decoder_forward.1
= control target key start
LH: loop header
LB: loop body
LE: loop exit
PB: predicated region body
PF: predicated region fallthrough
CT: control target
= control target key end

     0   :  { %v2186_v0 = vmov 0.0|0.0   ;;  %vm2187_vm0 = vmmov 0   ;;  %v2188_v4 = vmov 0.0   ;;  %vm52_vm1 = vcmask 261120   ;;  %s2189_s9 = smov 96   ;;  %s2190_s8 = smov 32   ;;  %s2618_s0 = inlined_call_operand.vmem [shape: f32[240,32], index: 0, kind: input, shape index: {}]   ;;  %s2619_s1 = inlined_call_operand.vmem [shape: f32[198,64], index: 1, kind: input, shape index: {}]   ;;  %s2620_s2 = inlined_call_operand.vmem [shape: f32[16,128], index: 2, kind: output, shape index: {}]  }
   0x1   :  { %1993 = vmatprep.subr.bf16.mxu0 %v2186_v0  ;;  %v11_v1 = vld [vmem:[%s2618_s0 + $0x70] sm:$0xff]  ;;  %v12_v2 = vld [vmem:[%s2618_s0 + $0x78] sm:$0xff]  ;;  %v13_v3 = vld [vmem:[%s2618_s0 + $0x80] sm:$0xff]  ;;  %1828 = vmatprep.mubr.msk.f32.mxu0 %vm2187_vm0, %v2188_v4  ;;  %v145_v36 = vlaneseq  ;;  %vm627_vm5 = vcmask 130048   ;;  %vm1668_vm6 = vcmask 392448   ;;  %vm1671_vm7 = vcmask 1047936  }
   0x2   :  { %v1994_v5 = vpack.c.bf16 %v12_v2, %v11_v1  ;;  %v14_v6 = vld [vmem:[%s2618_s0 + $0x88] sm:$0xff]  ;;  %v39_v8 = vld [vmem:[%s2618_s0] sm:$0xff]  ;;  %v42_v9 = vld [vmem:[%s2618_s0 + $0x18] sm:$0xff] }
   0x3   :  { %v1997_v7 = vpack.c.bf16 %v14_v6, %v13_v3  ;;  %v45_v10 = vadd.f32 %v42_v9, %v39_v8  ;;  %v40_v11 = vld [vmem:[%s2618_s0 + $0x8] sm:$0xff]  ;;  %v43_v12 = vld [vmem:[%s2618_s0 + $0x20] sm:$0xff]  ;;  %v41_v14 = vld [vmem:[%s2618_s0 + $0x10] sm:$0x1]  ;;  %v2266_v37 = vshrl.u32 %v145_v36, 7 }
   0x4   :  { %1995 = vmatpush3.bf16.msra.mxu0 %v1994_v5  ;;  %v46_v13 = vadd.f32 %v43_v12, %v40_v11  ;;  %v44_v15 = vld [vmem:[%s2618_s0 + $0x28] sm:$0x1]  ;;  %v160_v17 = vld [vmem:[%s2619_s1] sm:$0xff]  ;;  %v162_v20 = vld [vmem:[%s2619_s1 + $0x10] sm:$0xff] }
   0x5   :  { %1996 = vmatprep.subr.bf16.mxu0 %v2186_v0  ;;  %v47_v16 = vadd.f32 %v44_v15, %v41_v14  ;;  %v161_v18 = vld [vmem:[%s2619_s1 + $0x8] sm:$0xff]  ;;  %v163_v21 = vld [vmem:[%s2619_s1 + $0x18] sm:$0xff]  ;;  %v257_v23 = vld [vmem:[%s2619_s1 + $0x20] sm:$0xff]  ;;  %v147_v40 = vsub.s32 0, %v2266_v37  ;;  %vm152_vm2 = vcmp.lt.s32.totalorder %v2266_v37, 2  ;;  %vm151_vm3 = vcmp.lt.s32.totalorder %v2266_v37, 1 }
   0x6   :  { %v1999_v19 = vpack.c.bf16 %v161_v18, %v160_v17  ;;  %v2003_v22 = vpack.c.bf16 %v163_v21, %v162_v20  ;;  %v258_v24 = vld [vmem:[%s2619_s1 + $0x28] sm:$0xff]  ;;  %v1678_v27 = vld [vmem:[%s2619_s1 + $0xc0] ss:$0 sm:$0xff]  ;;  %v259_v45 = vld [vmem:[%s2619_s1 + $0x30] sm:$0xff] }
   0x7   :  { %v2007_v25 = vpack.c.bf16 %v258_v24, %v257_v23  ;;  %v260_v46 = vld [vmem:[%s2619_s1 + $0x38] sm:$0xff]  ;;  %v344_v55 = vld [vmem:[%s2619_s1 + $0x40] sm:$0xff]  ;;  %v345_v56 = vld [vmem:[%s2619_s1 + $0x48] sm:$0xff] }
   0x8   :  { %1998 = vmatpush3.bf16.msra.mxu0 %v1997_v7  ;;  %2000 = vmatprep.subr.bf16.mxu1 %v1999_v19  ;;  %v2011_v53 = vpack.c.bf16 %v260_v46, %v259_v45  ;;  %v2015_v58 = vpack.c.bf16 %v345_v56, %v344_v55  ;;  %v346_v59 = vld [vmem:[%s2619_s1 + $0x50] sm:$0xff]  ;;  %v347_v60 = vld [vmem:[%s2619_s1 + $0x58] sm:$0xff]  ;;  %v17_v2 = vld [vmem:[%s2618_s0 + $0xa0] sm:$0xff] }
   0x9   :  { %2002 = vmatpush3.bf16.msra.mxu1 %v1999_v19  ;;  %v2019_v62 = vpack.c.bf16 %v347_v60, %v346_v59  ;;  %v15_v0 = vld [vmem:[%s2618_s0 + $0x90] sm:$0xff]  ;;  %v16_v1 = vld [vmem:[%s2618_s0 + $0x98] sm:$0xff]  ;;  %v18_v5 = vld [vmem:[%s2618_s0 + $0xa8] sm:$0xff] }
   0xa   :  { %2004 = vmatprep.subr.bf16.mxu1 %v2003_v22  ;;  %v2336_v3 = vpack.c.bf16 %v16_v1, %v15_v0  ;;  %v2341_v6 = vpack.c.bf16 %v18_v5, %v17_v2  ;;  %v1684_v7 = vld [vmem:[%s2619_s1 + $0xc4] ss:$0 sm:$0xff]  ;;  %v31_v24 = vld [vmem:[%s2618_s0 + $0x30] sm:$0xff]  ;;  %vm2368_vm4 = vmpackc.low %vm52_vm1, %vm52_vm1 }
   0xb   :  { %1829 = vmatmul.mubr.msk.f32.vlgmr.msra.gmra.mrb[0].mxu0 %vm52_vm1, %v45_v10  ;;  %v19_v60 = vld [vmem:[%s2618_s0 + $0xb0] sm:$0xff]  ;;  %v22_v0 = vld [vmem:[%s2618_s0 + $0xc8] sm:$0xff]  ;;  %v1705_v37 = vld [vmem:[%s2619_s1 + $0xc5] ss:$0 sm:$0xff] }
   0xc   :  { %1831 = vmatprep.mubr.msk.f32.mxu0 %vm2187_vm0, %v2188_v4  ;;  %2024 = vmatprep.subr.bf16.mxu0 %v2336_v3 }
   0xd   :  { %2006 = vmatpush3.bf16.msra.mxu1 %v2003_v22  ;;  %2026 = vmatpush3.bf16.msra.mxu0 %v2336_v3 }
   0xe   :  { %2008 = vmatprep.subr.bf16.mxu1 %v2007_v25  ;;  %2028 = vmatprep.subr.bf16.mxu0 %v2341_v6 }
   0xf   :  { %1832 = vmatmul.mubr.msk.f32.gmra.mrb[2].mxu0 %vm52_vm1, %v46_v13 }
  0x10   :  { %1834 = vmatprep.mubr.msk.f32.mxu0 %vm2187_vm0, %v2188_v4 }
  0x11   :  { %2030 = vmatpush3.bf16.msra.mxu0 %v2341_v6 }
  0x13   :  { %1835 = vmatmul.mubr.msk.f32.gmra.mrb[4].mxu0 %vm52_vm1, %v47_v16 }
  0xde   :  { %v128_v26 = vpop.f32.mrb[0].mxu0 }
  0xdf   :  { %v1830_v28 = vpop.f32.mrb[1].mxu0  ;;  %v129_v29 = vadd.f32 %v1678_v27, %v128_v26 }
  0xe0   :  { %v2383_v28 = vld [vmem:[%s2619_s1 + $0xc1] ss:$0 sm:$0xff] }
  0xe2   :  { %v133_v30 = vpop.f32.mrb[2].mxu0 }
  0xe3   :  { %v134_v31 = vadd.f32 %v1678_v27, %v133_v30  ;;  %v1833_v32 = vpop.f32.mrb[3].mxu0 }
  0xe5   :  { %2132 = vtanh.f32 %v134_v31 }
  0xe6   :  { %2134 = vtanh.f32 %v129_v29  ;;  %v138_v33 = vpop.f32.mrb[4].mxu0 }
  0xe7   :  { %v139_v34 = vadd.f32 %v1678_v27, %v138_v33  ;;  %v1836_v35 = vpop.f32.mrb[5].mxu0 }
  0xe8   :  { %v2392_v35 = vld [vmem:[%s2618_s0 + $0x60] sm:$0xff] }
  0xe9   :  { %2136 = vtanh.f32 %v139_v34 }
  0xef   :  { %v2268_v38 = vpop.eup %2132 }
  0xf0   :  { %v2270_v39 = vpop.eup %2134  ;;  %v155_v41 = vrot.slane %v2268_v38, 6  ;;  %v252_v44 = vrot.slane %v2268_v38, 7 }
  0xf1   :  { %v154_v43 = vrot.slane %v2270_v39, 6  ;;  %v251_v50 = vrot.slane %v2270_v39, 7 }
  0xf3   :  { %v2137_v42 = vpop.eup %2136  ;;  %v157_v48 = vsel %vm152_vm2, %v155_v41, %v154_v43  ;;  %v156_v49 = vsel %vm152_vm2, %v154_v43, %v155_v41  ;;  %v254_v54 = vsel %vm151_vm3, %v252_v44, %v251_v50  ;;  %v253_v61 = vsel %vm151_vm3, %v251_v50, %v252_v44 }
  0xf4   :  { %v2283_v47 = vrot.slane %v2137_v42, %v147_v40  ;;  %v2397_v40 = vld [vmem:[%s2618_s0 + $0x68] sm:$0xff] }
  0xf6   :  { %v158_v51 = vsel %vm152_vm2, %v2283_v47, %v157_v48  ;;  %v159_v52 = vsel %vm152_vm2, %v2283_v47, %v156_v49  ;;  %v255_v57 = vsel %vm151_vm3, %v2283_v47, %v254_v54  ;;  %v256_v63 = vsel %vm151_vm3, %v2283_v47, %v253_v61  ;;  %v20_v61 = vld [vmem:[%s2618_s0 + $0xb8] sm:$0xff] }
  0xf7   :  { %1845 = vmatprep.mubr.msk.f32.mxu1 %vm52_vm1, %v158_v51 }
  0xf8   :  { %1846 = vmatmul.mubr.msk.f32.vlgmr.msra.gmra.mrb[0].mxu1 %vm52_vm1, %v159_v52 }
  0xf9   :  { %2010 = vmatpush3.bf16.msra.mxu1 %v2007_v25  ;;  %1856 = vmatprep.mubr.msk.f32.mxu1 %vm52_vm1, %v255_v57  ;;  %v32_v25 = vld [vmem:[%s2618_s0 + $0x38] sm:$0xff]  ;;  %v33_v57 = vld [vmem:[%s2618_s0 + $0x40] sm:$0xff] }
  0xfa   :  { %2012 = vmatprep.subr.bf16.mxu1 %v2011_v53  ;;  %v2372_v27 = vpack.c.bf16 %v32_v25, %v31_v24  ;;  %v936_v25 = vld [vmem:[%s2619_s1 + $0x80] sm:$0xff] }
  0xfc   :  { %2033 = vmatprep.subr.msk.bf16.mxu0 %vm2368_vm4, %v2372_v27 }
  0xfd   :  { %2014 = vmatpush3.bf16.msra.mxu1 %v2011_v53 }
  0xfe   :  { %2016 = vmatprep.subr.bf16.mxu1 %v2015_v58 }
 0x100   :  { %1857 = vmatmul.mubr.msk.f32.vlgmr.msra.gmra.mrb[0].mxu1 %vm52_vm1, %v256_v63  ;;  %v2424_v63 = vpack.c.bf16 %v20_v61, %v19_v60  ;;  %v1023_v61 = vld [vmem:[%s2619_s1 + $0xa0] sm:$0xff] }
 0x101   :  { %2018 = vmatpush3.bf16.msra.mxu1 %v2015_v58  ;;  %1867 = vmatprep.mubr.msk.f32.mxu1 %vm52_vm1, %v2270_v39  ;;  %v34_v58 = vld [vmem:[%s2618_s0 + $0x48] sm:$0xff] }
 0x102   :  { %2020 = vmatprep.subr.bf16.mxu1 %v2019_v62  ;;  %v2411_v59 = vpack.c.bf16 %v34_v58, %v33_v57 }
 0x105   :  { %2022 = vmatpush3.bf16.msra.mxu1 %v2019_v62  ;;  %v21_v62 = vld [vmem:[%s2618_s0 + $0xc0] sm:$0xff] }
 0x106   :  { %2038 = vmatprep.subr.bf16.mxu1 %v2411_v59  ;;  %v2429_v1 = vpack.c.bf16 %v22_v0, %v21_v62  ;;  %v1024_v62 = vld [vmem:[%s2619_s1 + $0xa8] sm:$0xff] }
 0x108   :  { %1868 = vmatmul.mubr.msk.f32.vlgmr.msra.gmra.mrb[0].mxu1 %vm52_vm1, %v2268_v38 }
 0x109   :  { %2040 = vmatpush3.bf16.msra.mxu1 %v2411_v59 }
 0x1db   :  { %v1869_v8 = vpop.f32.mrb[0].mxu1 }
 0x1dc   :  { %v2111_v9 = vadd.f32 %v1869_v8, %v1684_v7  ;;  %v420_v10 = vpop.f32.mrb[1].mxu1 }
 0x1dd   :  { %v2112_v11 = vadd.f32 %v1684_v7, %v420_v10 }
 0x1de   :  { %v1690_v12 = vmul.f32 -1.442695, %v2111_v9 }
 0x1df   :  { %v1689_v13 = vmul.f32 -1.442695, %v2112_v11 }
 0x1e0   :  { %2138 = vpow2.f32 %v1690_v12 }
 0x1e1   :  { %2140 = vpow2.f32 %v1689_v13 }
 0x1ea   :  { %v2139_v14 = vpop.eup %2138 }
 0x1eb   :  { %v2141_v15 = vpop.eup %2140  ;;  %v438_v17 = vadd.f32 1.0, %v2139_v14 }
 0x1ec   :  { %v437_v16 = vadd.f32 1.0, %v2141_v15 }
 0x1ee   :  { %2142 = vrcp.f32 %v437_v16 }
 0x1ef   :  { %2144 = vrcp.f32 %v438_v17 }
 0x1f8   :  { %v2143_v18 = vpop.eup %2142 }
 0x1f9   :  { %445 = vrot.lane.b32.xlu0 %v2143_v18, %s2189_s9  ;;  %v2145_v19 = vpop.eup %2144 }
 0x1fd   :  { %447 = vrot.lane.b32.xlu0 %v2145_v19, %s2189_s9  ;;  %v839_v19 = vld [vmem:[%s2619_s1 + $0x60] sm:$0xff] }
 0x26b   :  { %v446_v20 = vpop.permute.xlu0 %445 }
 0x26c   :  { %v2352_v21 = vmul.f32 %v2112_v11, %v446_v20  ;;  %v840_v20 = vld [vmem:[%s2619_s1 + $0x68] sm:$0xff] }
 0x26e   :  { %1878 = vmatprep.mubr.msk.f32.mxu0 %vm52_vm1, %v2352_v21 }
 0x26f   :  { %v448_v22 = vpop.permute.xlu0 %447 }
 0x270   :  { %v2356_v23 = vmul.f32 %v2111_v9, %v448_v22  ;;  %v2049_v22 = vpack.c.bf16 %v840_v20, %v839_v19 }
 0x272   :  { %1879 = vmatmul.mubr.msk.f32.vlgmr.msra.gmra.mrb[6].mxu0 %vm52_vm1, %v2356_v23  ;;  %2050 = vmatprep.subr.bf16.mxu1 %v2049_v22 }
 0x273   :  { %2036 = vmatpush3.bf16.xpose.msk.msra.mxu0 %vm2368_vm4, %v2372_v27 }
 0x274   :  { %2042 = vmatprep.subr.bf16.mxu0 %v2424_v63 }
 0x345   :  { %v1880_v29 = vpop.f32.mrb[6].mxu0 }
 0x346   :  { %v535_v30 = vadd.f32 %v1880_v29, %v2383_v28  ;;  %v529_v31 = vpop.f32.mrb[7].mxu0  ;;  %v937_v29 = vld [vmem:[%s2619_s1 + $0x88] sm:$0xff] }
 0x347   :  { %v530_v32 = vadd.f32 %v2383_v28, %v529_v31  ;;  %v2467_v31 = vld [vmem:[%s2619_s1 + $0xc2] ss:$0 sm:$0xff] }
 0x349   :  { %2146 = vtanh.f32 %v530_v32 }
 0x34a   :  { %2148 = vtanh.f32 %v535_v30  ;;  %v2057_v30 = vpack.c.bf16 %v937_v29, %v936_v25 }
 0x353   :  { %v2147_v33 = vpop.eup %2146 }
 0x354   :  { %v2149_v34 = vpop.eup %2148  ;;  %1885 = vmatprep.mubr.msk.f32.mxu0 %vm52_vm1, %v2147_v33 }
 0x355   :  { %1886 = vmatmul.mubr.msk.f32.vlgmr.msra.gmra.mrb[8].mxu0 %vm52_vm1, %v2149_v34 }
 0x356   :  { %2044 = vmatpush3.bf16.msra.mxu0 %v2424_v63 }
 0x357   :  { %2046 = vmatprep.subr.bf16.mxu0 %v2429_v1 }
 0x35a   :  { %2048 = vmatpush3.bf16.msra.mxu0 %v2429_v1 }
 0x35b   :  { %2074 = vmatprep.subr.bf16.mxu0 %v2336_v3 }
 0x428   :  { %v1887_v36 = vpop.f32.mrb[8].mxu0 }
 0x429   :  { %v618_v41 = vpop.f32.mrb[9].mxu0  ;;  %v624_v43 = vadd.f32 %v1887_v36, %v2397_v40 }
 0x42a   :  { %v619_v42 = vadd.f32 %v618_v41, %v2392_v35 }
 0x42b   :  { %v631_v45 = vsel %vm627_vm5, %v624_v43, -inf }
 0x42c   :  { %v628_v44 = vsel %vm627_vm5, %v619_v42, -inf }
 0x42d   :  { %629 = vmax.xlane.f32.xlu1 %v628_v44 }
 0x431   :  { %632 = vmax.xlane.f32.xlu1 %v631_v45 }
 0x4ba   :  { %v630_v46 = vpop.xlane.xlu1 %629 }
 0x4bb   :  { %v634_v48 = vsub.f32 %v619_v42, %v630_v46 }
 0x4bd   :  { %v636_v49 = vmul.f32 1.442695, %v634_v48 }
 0x4be   :  { %v633_v50 = vpop.xlane.xlu1 %632 }
 0x4bf   :  { %2150 = vpow2.f32 %v636_v49  ;;  %v635_v51 = vsub.f32 %v624_v43, %v633_v50 }
 0x4c1   :  { %v638_v52 = vmul.f32 1.442695, %v635_v51 }
 0x4c3   :  { %2152 = vpow2.f32 %v638_v52 }
 0x4c9   :  { %v2151_v53 = vpop.eup %2150 }
 0x4ca   :  { %v640_v54 = vsel %vm627_vm5, %v2151_v53, 0.0 }
 0x4cb   :  { %641 = vadd.xlane.f32.xlu0 %v640_v54 }
 0x4cd   :  { %v2153_v55 = vpop.eup %2152 }
 0x4ce   :  { %v643_v56 = vsel %vm627_vm5, %v2153_v55, 0.0 }
 0x4cf   :  { %644 = vadd.xlane.f32.xlu1 %v643_v56 }
 0x558   :  { %v642_v2 = vpop.xlane.xlu0 %641 }
 0x559   :  { %2154 = vrcp.f32 %v642_v2 }
 0x55c   :  { %v645_v5 = vpop.xlane.xlu1 %644 }
 0x55d   :  { %2156 = vrcp.f32 %v645_v5 }
 0x563   :  { %v2155_v7 = vpop.eup %2154 }
 0x564   :  { %v648_v8 = vmul.f32 %v2155_v7, %v642_v2  ;;  %v2065_v2 = vpack.c.bf16 %v1024_v62, %v1023_v61 }
 0x566   :  { %v650_v9 = vsub.f32 2.0, %v648_v8 }
 0x567   :  { %v2157_v10 = vpop.eup %2156 }
 0x568   :  { %v652_v11 = vmul.f32 %v2155_v7, %v650_v9  ;;  %v649_v12 = vmul.f32 %v2157_v10, %v645_v5  ;;  %v1025_v5 = vld [vmem:[%s2619_s1 + $0xb0] sm:$0xff]  ;;  %v1026_v7 = vld [vmem:[%s2619_s1 + $0xb8] sm:$0xff] }
 0x569   :  { %v2069_v9 = vpack.c.bf16 %v1026_v7, %v1025_v5 }
 0x56a   :  { %v654_v13 = vmul.f32 %v2151_v53, %v652_v11  ;;  %v651_v14 = vsub.f32 2.0, %v649_v12 }
 0x56c   :  { %v653_v15 = vmul.f32 %v2157_v10, %v651_v14  ;;  %1892 = vmatprep.mubr.msk.f32.mxu1 %vm627_vm5, %v654_v13 }
 0x56e   :  { %v655_v16 = vmul.f32 %v2153_v55, %v653_v15 }
 0x570   :  { %1893 = vmatmul.mubr.msk.f32.vlgmr.msra.gmra.mrb[2].mxu1 %vm627_vm5, %v655_v16 }
 0x571   :  { %2052 = vmatpush3.bf16.msra.mxu1 %v2049_v22 }
 0x643   :  { %v1894_v17 = vpop.f32.mrb[2].mxu1 }
 0x644   :  { %v728_v18 = vpop.f32.mrb[3].mxu1 }
 0x645   :  { %1903 = vmatprep.mubr.msk.f32.mxu0 %vm52_vm1, %v728_v18 }
 0x646   :  { %1904 = vmatmul.mubr.msk.f32.vlgmr.msra.gmra.mrb[10].mxu0 %vm52_vm1, %v1894_v17 }
 0x647   :  { %2076 = vmatpush3.bf16.msra.mxu0 %v2336_v3  ;;  %v841_v3 = vld [vmem:[%s2619_s1 + $0x70] sm:$0xff] }
 0x648   :  { %2078 = vmatprep.subr.bf16.mxu0 %v2341_v6 }
 0x64b   :  { %2080 = vmatpush3.bf16.msra.mxu0 %v2341_v6  ;;  %v842_v6 = vld [vmem:[%s2619_s1 + $0x78] sm:$0xff] }
 0x64c   :  { %2083 = vmatprep.subr.msk.bf16.mxu0 %vm2368_vm4, %v2372_v27  ;;  %v2053_v24 = vpack.c.bf16 %v842_v6, %v841_v3 }
 0x64e   :  { %2054 = vmatprep.subr.bf16.mxu1 %v2053_v24 }
 0x64f   :  { %2056 = vmatpush3.bf16.msra.mxu1 %v2053_v24 }
 0x650   :  { %2058 = vmatprep.subr.bf16.mxu1 %v2057_v30 }
 0x719   :  { %v1905_v32 = vpop.f32.mrb[10].mxu0 }
 0x71a   :  { %v819_v33 = vadd.f32 %v1905_v32, %v2467_v31  ;;  %v813_v34 = vpop.f32.mrb[11].mxu0 }
 0x71b   :  { %v814_v36 = vadd.f32 %v2467_v31, %v813_v34 }
 0x71c   :  { %2158 = vtanh.f32 %v819_v33 }
 0x71d   :  { %2160 = vtanh.f32 %v814_v36 }
 0x726   :  { %v2159_v41 = vpop.eup %2158 }
 0x727   :  { %v2161_v42 = vpop.eup %2160  ;;  %v825_v43 = vadd.f32 %v2159_v41, %v2356_v23 }
 0x728   :  { %v824_v44 = vadd.f32 %v2161_v42, %v2352_v21  ;;  %v938_v21 = vld [vmem:[%s2619_s1 + $0x90] sm:$0xff] }
 0x729   :  { %v827_v45 = vmul.f32 0.70710677, %v825_v43 }
 0x72a   :  { %v826_v46 = vmul.f32 0.70710677, %v824_v44 }
 0x72b   :  { %v829_v48 = vadd.f32 %v2268_v38, %v827_v45  ;;  %v939_v38 = vld [vmem:[%s2619_s1 + $0x98] sm:$0xff] }
 0x72c   :  { %v828_v49 = vadd.f32 %v2270_v39, %v826_v46  ;;  %v2061_v60 = vpack.c.bf16 %v939_v38, %v938_v21 }
 0x72d   :  { %v2475_v50 = vmul.f32 0.70710677, %v829_v48 }
 0x72e   :  { %v2477_v51 = vmul.f32 0.70710677, %v828_v49 }
 0x72f   :  { %v834_v52 = vrot.slane %v2475_v50, 6  ;;  %v931_v53 = vrot.slane %v2475_v50, 7 }
 0x730   :  { %v833_v54 = vrot.slane %v2477_v51, 6  ;;  %v930_v23 = vrot.slane %v2477_v51, 7 }
 0x732   :  { %v836_v39 = vsel %vm152_vm2, %v834_v52, %v833_v54  ;;  %v835_v55 = vsel %vm152_vm2, %v833_v54, %v834_v52  ;;  %v933_v56 = vsel %vm151_vm3, %v931_v53, %v930_v23  ;;  %v932_v8 = vsel %vm151_vm3, %v930_v23, %v931_v53  ;;  %v35_v54 = vld [vmem:[%s2618_s0 + $0x50] sm:$0xff]  ;;  %v36_v23 = vld [vmem:[%s2618_s0 + $0x58] sm:$0xff] }
 0x733   :  { %v837_v57 = vsel %vm152_vm2, %v2283_v47, %v836_v39  ;;  %v838_v58 = vsel %vm152_vm2, %v2283_v47, %v835_v55  ;;  %v934_v0 = vsel %vm151_vm3, %v2283_v47, %v933_v56  ;;  %v935_v10 = vsel %vm151_vm3, %v2283_v47, %v932_v8 }
 0x734   :  { %1914 = vmatprep.mubr.msk.f32.mxu1 %vm52_vm1, %v837_v57  ;;  %v2099_v21 = vpack.c.bf16 %v36_v23, %v35_v54 }
 0x735   :  { %1915 = vmatmul.mubr.msk.f32.vlgmr.msra.gmra.mrb[4].mxu1 %vm52_vm1, %v838_v58 }
 0x736   :  { %2060 = vmatpush3.bf16.msra.mxu1 %v2057_v30  ;;  %1925 = vmatprep.mubr.msk.f32.mxu1 %vm52_vm1, %v934_v0 }
 0x737   :  { %2062 = vmatprep.subr.bf16.mxu1 %v2061_v60 }
 0x73a   :  { %2064 = vmatpush3.bf16.msra.mxu1 %v2061_v60 }
 0x73b   :  { %2066 = vmatprep.subr.bf16.mxu1 %v2065_v2 }
 0x73d   :  { %1926 = vmatmul.mubr.msk.f32.vlgmr.msra.gmra.mrb[4].mxu1 %vm52_vm1, %v935_v10  ;;  %v24_v10 = vld [vmem:[%s2618_s0 + $0xd8] sm:$0xff] }
 0x73e   :  { %2068 = vmatpush3.bf16.msra.mxu1 %v2065_v2  ;;  %1936 = vmatprep.mubr.msk.f32.mxu1 %vm52_vm1, %v2477_v51 }
 0x73f   :  { %2070 = vmatprep.subr.bf16.mxu1 %v2069_v9 }
 0x742   :  { %2072 = vmatpush3.bf16.msra.mxu1 %v2069_v9  ;;  %v23_v9 = vld [vmem:[%s2618_s0 + $0xd0] sm:$0xff] }
 0x743   :  { %2088 = vmatprep.subr.bf16.mxu1 %v2411_v59 }
 0x745   :  { %1937 = vmatmul.mubr.msk.f32.vlgmr.msra.gmra.mrb[4].mxu1 %vm52_vm1, %v2475_v50 }
 0x746   :  { %2090 = vmatpush3.bf16.msra.mxu1 %v2411_v59 }
 0x747   :  { %2092 = vmatprep.subr.bf16.mxu1 %v2424_v63 }
 0x818   :  { %v1938_v47 = vpop.f32.mrb[4].mxu1 }
 0x819   :  { %v2113_v11 = vadd.f32 %v1938_v47, %v1705_v37  ;;  %v1099_v12 = vpop.f32.mrb[5].mxu1 }
 0x81a   :  { %v2114_v13 = vadd.f32 %v1705_v37, %v1099_v12  ;;  %v2103_v37 = vpack.c.bf16 %v24_v10, %v23_v9 }
 0x81b   :  { %v1711_v14 = vmul.f32 -1.442695, %v2113_v11 }
 0x81c   :  { %v1710_v15 = vmul.f32 -1.442695, %v2114_v13 }
 0x81d   :  { %2162 = vpow2.f32 %v1711_v14 }
 0x81e   :  { %2164 = vpow2.f32 %v1710_v15 }
 0x827   :  { %v2163_v16 = vpop.eup %2162 }
 0x828   :  { %v2165_v17 = vpop.eup %2164  ;;  %v1117_v19 = vadd.f32 1.0, %v2163_v16 }
 0x829   :  { %v1116_v18 = vadd.f32 1.0, %v2165_v17 }
 0x82b   :  { %2166 = vrcp.f32 %v1116_v18 }
 0x82c   :  { %2168 = vrcp.f32 %v1117_v19 }
 0x835   :  { %v2167_v59 = vpop.eup %2166 }
 0x836   :  { %1124 = vrot.lane.b32.xlu1 %v2167_v59, %s2189_s9  ;;  %v2169_v20 = vpop.eup %2168 }
 0x83a   :  { %1126 = vrot.lane.b32.xlu1 %v2169_v20, %s2189_s9 }
 0x8a8   :  { %v1125_v22 = vpop.permute.xlu1 %1124 }
 0x8a9   :  { %v2537_v3 = vmul.f32 %v2114_v13, %v1125_v22 }
 0x8ab   :  { %1947 = vmatprep.mubr.msk.f32.mxu0 %vm52_vm1, %v2537_v3 }
 0x8ac   :  { %v1127_v6 = vpop.permute.xlu1 %1126 }
 0x8ad   :  { %v2541_v24 = vmul.f32 %v2113_v11, %v1127_v6 }
 0x8af   :  { %1948 = vmatmul.mubr.msk.f32.vlgmr.msra.gmra.mrb[12].mxu0 %vm52_vm1, %v2541_v24 }
 0x8b0   :  { %2086 = vmatpush3.bf16.xpose.msk.msra.mxu0 %vm2368_vm4, %v2372_v27 }
 0x8b1   :  { %2100 = vmatprep.subr.bf16.mxu0 %v2099_v21 }
 0x982   :  { %v1949_v25 = vpop.f32.mrb[12].mxu0 }
 0x983   :  { %v1210_v29 = vadd.f32 %v1949_v25, %v2383_v28  ;;  %v1204_v30 = vpop.f32.mrb[13].mxu0 }
 0x984   :  { %v1205_v32 = vadd.f32 %v2383_v28, %v1204_v30 }
 0x986   :  { %2170 = vtanh.f32 %v1205_v32 }
 0x987   :  { %2172 = vtanh.f32 %v1210_v29 }
 0x990   :  { %v2171_v33 = vpop.eup %2170 }
 0x991   :  { %v2173_v34 = vpop.eup %2172  ;;  %1954 = vmatprep.mubr.msk.f32.mxu0 %vm52_vm1, %v2171_v33 }
 0x992   :  { %1955 = vmatmul.mubr.msk.f32.vlgmr.msra.gmra.mrb[14].mxu0 %vm52_vm1, %v2173_v34 }
 0x993   :  { %2102 = vmatpush3.bf16.msra.mxu0 %v2099_v21 }
 0x994   :  { %2104 = vmatprep.subr.bf16.mxu0 %v2103_v37 }
 0xa65   :  { %v1956_v36 = vpop.f32.mrb[14].mxu0 }
 0xa66   :  { %v1293_v41 = vadd.f32 %v1956_v36, %v2397_v40  ;;  %v1287_v42 = vpop.f32.mrb[15].mxu0 }
 0xa67   :  { %v1288_v26 = vadd.f32 %v1287_v42, %v2392_v35 }
 0xa68   :  { %v1299_v27 = vsel %vm627_vm5, %v1293_v41, -inf }
 0xa69   :  { %1300 = vmax.xlane.f32.xlu0 %v1299_v27  ;;  %v1296_v43 = vsel %vm627_vm5, %v1288_v26, -inf }
 0xa6a   :  { %1297 = vmax.xlane.f32.xlu1 %v1296_v43 }
 0xaf6   :  { %v1301_v28 = vpop.xlane.xlu0 %1300 }
 0xaf7   :  { %v1303_v44 = vsub.f32 %v1293_v41, %v1301_v28  ;;  %v1298_v45 = vpop.xlane.xlu1 %1297 }
 0xaf8   :  { %v1302_v46 = vsub.f32 %v1288_v26, %v1298_v45 }
 0xaf9   :  { %v1306_v48 = vmul.f32 1.442695, %v1303_v44 }
 0xafa   :  { %v1304_v49 = vmul.f32 1.442695, %v1302_v46 }
 0xafc   :  { %2174 = vpow2.f32 %v1304_v49 }
 0xafd   :  { %2176 = vpow2.f32 %v1306_v48 }
 0xb06   :  { %v2175_v52 = vpop.eup %2174 }
 0xb07   :  { %v1308_v40 = vsel %vm627_vm5, %v2175_v52, 0.0  ;;  %v2177_v53 = vpop.eup %2176 }
 0xb08   :  { %1309 = vadd.xlane.f32.xlu0 %v1308_v40  ;;  %v1311_v35 = vsel %vm627_vm5, %v2177_v53, 0.0 }
 0xb0c   :  { %1312 = vadd.xlane.f32.xlu0 %v1311_v35 }
 0xb95   :  { %v1310_v38 = vpop.xlane.xlu0 %1309 }
 0xb96   :  { %2178 = vrcp.f32 %v1310_v38 }
 0xb99   :  { %v1313_v39 = vpop.xlane.xlu0 %1312 }
 0xb9a   :  { %2180 = vrcp.f32 %v1313_v39 }
 0xba0   :  { %v2179_v55 = vpop.eup %2178 }
 0xba1   :  { %v1316_v56 = vmul.f32 %v2179_v55, %v1310_v38 }
 0xba3   :  { %v1318_v57 = vsub.f32 2.0, %v1316_v56 }
 0xba4   :  { %v2181_v58 = vpop.eup %2180 }
 0xba5   :  { %v1320_v60 = vmul.f32 %v2179_v55, %v1318_v57  ;;  %v1317_v61 = vmul.f32 %v2181_v58, %v1313_v39 }
 0xba7   :  { %v1319_v62 = vsub.f32 2.0, %v1317_v61  ;;  %v1322_v0 = vmul.f32 %v2175_v52, %v1320_v60 }
 0xba9   :  { %v1321_v2 = vmul.f32 %v2181_v58, %v1319_v62  ;;  %1662 = vrot.lane.b32.xlu0 %v1322_v0, %s2190_s8  ;;  %1961 = vmatprep.mubr.msk.f32.mxu1 %vm627_vm5, %v1322_v0 }
 0xbaa   :  { %1979 = vmatprep.mubr.msk.f32.mxu0 %vm627_vm5, %v1322_v0 }
 0xbab   :  { %v1323_v5 = vmul.f32 %v2177_v53, %v1321_v2 }
 0xbad   :  { %1664 = vrot.lane.b32.xlu1 %v1323_v5, %s2190_s8  ;;  %1962 = vmatmul.mubr.msk.f32.vlgmr.msra.gmra.mrb[6].mxu1 %vm627_vm5, %v1323_v5 }
 0xbae   :  { %1980 = vmatmul.mubr.msk.f32.vlgmr.msra.gmra.mrb[16].mxu0 %vm627_vm5, %v1323_v5  ;;  %2094 = vmatpush3.bf16.msra.mxu1 %v2424_v63  ;;  %v25_v63 = vld [vmem:[%s2618_s0 + $0xe0] sm:$0xff] }
 0xbaf   :  { %2096 = vmatprep.subr.bf16.mxu1 %v2429_v1  ;;  %2106 = vmatpush3.bf16.msra.mxu0 %v2103_v37 }
 0xbb2   :  { %2098 = vmatpush3.bf16.msra.mxu1 %v2429_v1  ;;  %v26_v1 = vld [vmem:[%s2618_s0 + $0xe8] sm:$0xff] }
 0xbb3   :  { %v2107_v47 = vpack.c.bf16 %v26_v1, %v25_v63 }
 0xbb5   :  { %2108 = vmatprep.subr.bf16.mxu0 %v2107_v47 }
 0xbb6   :  { %2110 = vmatpush3.bf16.msra.mxu0 %v2107_v47 }
 0xc1f   :  { %v1665_v33 = vpop.permute.xlu1 %1664 }
 0xc80   :  { %v1963_v7 = vpop.f32.mrb[6].mxu1 }
 0xc81   :  { %v1396_v8 = vpop.f32.mrb[7].mxu1 }
 0xc82   :  { %1972 = vmatprep.mubr.msk.f32.mxu1 %vm52_vm1, %v1396_v8 }
 0xc83   :  { %1973 = vmatmul.mubr.msk.f32.vlgmr.msra.gmra.mrb[8].mxu1 %vm52_vm1, %v1963_v7 }
 0xd56   :  { %v1974_v11 = vpop.f32.mrb[8].mxu1 }
 0xd57   :  { %v1483_v12 = vadd.f32 %v1974_v11, %v2467_v31  ;;  %v1477_v13 = vpop.f32.mrb[9].mxu1 }
 0xd58   :  { %v1478_v14 = vadd.f32 %v2467_v31, %v1477_v13  ;;  %v1724_v31 = vld [vmem:[%s2619_s1 + $0xc3] ss:$0 sm:$0xff] }
 0xd59   :  { %2182 = vtanh.f32 %v1483_v12 }
 0xd5a   :  { %2184 = vtanh.f32 %v1478_v14 }
 0xd63   :  { %v2183_v15 = vpop.eup %2182 }
 0xd64   :  { %v2185_v16 = vpop.eup %2184  ;;  %v1489_v17 = vadd.f32 %v2183_v15, %v2541_v24 }
 0xd65   :  { %v1488_v18 = vadd.f32 %v2185_v16, %v2537_v3 }
 0xd66   :  { %v1491_v19 = vmul.f32 0.70710677, %v1489_v17 }
 0xd67   :  { %v1490_v59 = vmul.f32 0.70710677, %v1488_v18 }
 0xd68   :  { %v1493_v20 = vadd.f32 %v1491_v19, %v2475_v50 }
 0xd69   :  { %v1492_v22 = vadd.f32 %v1490_v59, %v2477_v51  ;;  %v1663_v51 = vpop.permute.xlu0 %1662 }
 0xd6a   :  { %v1495_v25 = vmul.f32 0.70710677, %v1493_v20 }
 0xd6b   :  { %v1494_v6 = vmul.f32 0.70710677, %v1492_v22 }
 0xd6d   :  { %1990 = vmatprep.mubr.msk.f32.mxu0 %vm52_vm1, %v1494_v6 }
 0xd6e   :  { %1991 = vmatmul.mubr.msk.f32.vlgmr.msra.gmra.mrb[16].mxu0 %vm52_vm1, %v1495_v25 }
 0xe41   :  { %v1992_v29 = vpop.f32.mrb[16].mxu0 }
 0xe42   :  { %v1653_v24 = vadd.f32 %v1992_v29, %v1724_v31  ;;  %v1647_v30 = vpop.f32.mrb[17].mxu0 }
 0xe43   :  { %v1648_v3 = vadd.f32 %v1724_v31, %v1647_v30 }
 0xe44   :  { %v1659_v32 = vmul.f32 0.70710677, %v1653_v24 }
 0xe45   :  { %v1658_v50 = vmul.f32 0.70710677, %v1648_v3 }
 0xe46   :  { %1661 = vst.msk [vmem:[%s2620_s2 + $0x8] sm:$0xff] %vm52_vm1, %v1659_v32 }
 0xe47   :  { %1670 = vst.msk [vmem:[%s2620_s2 + $0x8] sm:$0xff] %vm1668_vm6, %v1665_v33 }
 0xe48   :  { %1660 = vst.msk [vmem:[%s2620_s2] sm:$0xff] %vm52_vm1, %v1658_v50 }
 0xe49   :  { %1673 = vst.msk [vmem:[%s2620_s2 + $0x8] sm:$0xff] %vm1671_vm7, %v2188_v4 }
 0xe4a   :  { %1669 = vst.msk [vmem:[%s2620_s2] sm:$0xff] %vm1668_vm6, %v1663_v51 }
 0xe4b   :  { %1672 = vst.msk [vmem:[%s2620_s2] sm:$0xff] %vm1671_vm7, %v2188_v4 }

</bundles_post_ra>
